<compile_context>
chip_gen: v6e
topology: v6e:2x2x1
jax: 0.10.0
libtpu: 0.0.40
codegen_flags: <defaults>
</compile_context>

<pallas_src>
import functools
import math

import jax
import jax.numpy as jnp
import numpy as np
from jax.experimental import pallas as pl
from jax.experimental.pallas import tpu as pltpu


def _round_up(x, m):
    return ((x + m - 1) // m) * m


# ----------------------------------------------------------------------------
# Pallas kernel: stride-1 VALID 1-D conv, channels-last, tiled over (N, L_out)
# ----------------------------------------------------------------------------
def _conv1d_s1_kernel(xm_ref, xh_ref, w_ref, b_ref, o_ref, *, Q, im2col):
    # xm_ref: (1, TM, C)    main input rows of this output tile
    # xh_ref: (1, 1, TH, C) halo rows (the rows right after the main block)
    # w_ref : (Q*C, Co) if im2col else (Q, C, Co)  -- VMEM resident
    # b_ref : (1, Co)
    # o_ref : (1, TM, Co)
    TM = o_ref.shape[1]
    Co = o_ref.shape[2]

    xm = xm_ref[0]                                           # (TM, C)
    if Q > 1:
        xw = jnp.concatenate([xm, xh_ref[0, 0]], axis=0)     # (TM + TH, C)
    else:
        xw = xm

    if im2col:
        # fold all taps into one matmul: (TM, Q*C) @ (Q*C, Co)
        lhs = jnp.concatenate([xw[q:q + TM, :] for q in range(Q)], axis=1)
        acc = jnp.dot(lhs, w_ref[...], preferred_element_type=jnp.float32)
    else:
        # C >= 128: each tap already feeds the MXU with a deep contraction
        acc = jnp.zeros((TM, Co), jnp.float32)
        for q in range(Q):                                   # static unroll
            acc = acc + jnp.dot(xw[q:q + TM, :], w_ref[q],
                                preferred_element_type=jnp.float32)

    acc = acc + b_ref[...].astype(jnp.float32)
    o_ref[0] = acc.astype(o_ref.dtype)


def conv1d_stride1_pallas(x_nlc, w_qic, b_c, *, tile_m=256, compute_dtype=None):
    """Stride-1 VALID conv.  x:(N,L,C)  w:(Q,C,Co)  b:(Co,) -> (N, L-Q+1, Co)."""
    N, L, C = x_nlc.shape
    Q, C2, Co = w_qic.shape
    assert C2 == C
    M = L - Q + 1
    assert M >= 1
    out_dtype = x_nlc.dtype
    if compute_dtype is not None:
        x_nlc = x_nlc.astype(compute_dtype)
        w_qic = w_qic.astype(compute_dtype)

    TM = min(int(tile_m), _round_up(M, 8))      # output-rows tile (multiple of 8)
    nt = -(-M // TM)
    M_pad = nt * TM
    TH = max(Q - 1, 1)                          # halo rows per tile

    # zero-extend so every main block and its halo are in bounds
    x_ext = jnp.pad(x_nlc, ((0, 0), (0, M_pad + TH - L), (0, 0)))
    x_main = x_ext[:, :M_pad, :]                                    # (N, M_pad, C)
    halo_idx = (jnp.arange(nt) + 1)[:, None] * TM + jnp.arange(TH)[None, :]
    x_halo = x_ext[:, halo_idx, :]                                  # (N, nt, TH, C)
    b2 = b_c.reshape(1, Co)

    im2col = C < 128
    if im2col:
        w_arg = w_qic.reshape(Q * C, Co)
        w_spec = pl.BlockSpec((Q * C, Co), lambda n, j: (0, 0))     # resident
    else:
        w_arg = w_qic
        w_spec = pl.BlockSpec((Q, C, Co), lambda n, j: (0, 0, 0))   # resident

    kernel = functools.partial(_conv1d_s1_kernel, Q=Q, im2col=im2col)
    out = pl.pallas_call(
        kernel,
        out_shape=jax.ShapeDtypeStruct((N, M_pad, Co), out_dtype),
        grid_spec=pl.GridSpec(
            grid=(N, nt),
            in_specs=[
                pl.BlockSpec((1, TM, C), lambda n, j: (n, j, 0)),
                pl.BlockSpec((1, 1, TH, C), lambda n, j: (n, j, 0, 0)),
                w_spec,
                pl.BlockSpec((1, Co), lambda n, j: (0, 0)),
            ],
            out_specs=pl.BlockSpec((1, TM, Co), lambda n, j: (n, j, 0)),
        ),
        compiler_params=pltpu.CompilerParams(
            dimension_semantics=("parallel", "parallel"),
            vmem_limit_bytes=32 * 1024 * 1024,
        ),
    )(x_main, x_halo, w_arg, b2)
    return out[:, :M, :]


def conv1d_valid_pallas(x_nlc, w_kic, b_c, stride, *, tile_m=256, compute_dtype=None):
    """VALID 1-D conv with stride via phase-packing to a stride-1 conv."""
    N, L, C = x_nlc.shape
    K, _, Co = w_kic.shape
    S = int(stride)
    L_out = (L - K) // S + 1
    if S == 1:
        return conv1d_stride1_pallas(x_nlc, w_kic, b_c,
                                     tile_m=tile_m, compute_dtype=compute_dtype)
    # x'[m, p*C + c] = x[m*S + p, c];  w'[q, p*C + c, co] = w[q*S + p, c, co]
    Q = -(-K // S)
    need = (L_out + Q - 1) * S
    if need > L:
        x_nlc = jnp.pad(x_nlc, ((0, 0), (0, need - L), (0, 0)))
    elif need < L:
        x_nlc = x_nlc[:, :need, :]
    xg = x_nlc.reshape(N, L_out + Q - 1, S * C)
    taps = []
    for q in range(Q):
        blocks = []
        for p in range(S):
            k = q * S + p
            blocks.append(w_kic[k] if k < K else jnp.zeros((C, Co), w_kic.dtype))
        taps.append(jnp.concatenate(blocks, axis=0))       # (S*C, Co)
    w_eff = jnp.stack(taps, axis=0)                        # (Q, S*C, Co)
    return conv1d_stride1_pallas(xg, w_eff, b_c, tile_m=tile_m,
                                 compute_dtype=compute_dtype)


def conv_transpose1d_pallas(x_ncl, w_iok, b_o, *, stride, padding, output_padding,
                            tile_m=256, compute_dtype=None):
    """ConvTranspose1d via polyphase decomposition (no dilated zero tensor)."""
    N, Ci, L = x_ncl.shape
    _, Co, K = w_iok.shape
    S, P, OP = int(stride), int(padding), int(output_padding)
    L_out = (L - 1) * S - 2 * P + K + OP
    Q = -(-K // S)
    M = -(-(L_out + P) // S)
    # w_eff[j, ci, r*Co + co] = W[ci, co, r + (Q-1-j)*S]  (0 when the tap >= K)
    taps = []
    for j in range(Q):
        phases = []
        for r in range(S):
            k = r + (Q - 1 - j) * S
            phases.append(w_iok[:, :, k] if k < K else jnp.zeros((Ci, Co), w_iok.dtype))
        taps.append(jnp.concatenate(phases, axis=1))       # (Ci, S*Co)
    w_eff = jnp.stack(taps, axis=0)                        # (Q, Ci, S*Co)
    b_eff = jnp.tile(b_o, S)                               # (S*Co,)

    xp = jnp.transpose(x_ncl, (0, 2, 1))                   # (N, L, Ci)
    xp = jnp.pad(xp, ((0, 0), (Q - 1, max(0, M - L)), (0, 0)))
    y = conv1d_stride1_pallas(xp, w_eff, b_eff, tile_m=tile_m,
                              compute_dtype=compute_dtype)  # (N, M', S*Co)
    Mp = y.shape[1]
    y = y.reshape(N, Mp * S, Co)[:, P:P + L_out, :]        # interleave phases, crop
    return jnp.transpose(y, (0, 2, 1))                      # (N, Co, L_out)


# ----------------------------------------------------------------------------
# Module wrapper (parameter setup + glue in plain JAX)
# ----------------------------------------------------------------------------
class Transpose1dLayerMultiInput:
    def __init__(self, in_channels, out_channels, kernel_size, stride,
                 padding=11, upsample=None, output_padding=1, *, key,
                 tile_m=256, compute_dtype=None):
        self.upsample = upsample
        self.kernel_size = kernel_size
        self.stride = stride
        self.padding = padding
        self.output_padding = output_padding
        self.tile_m = tile_m
        self.compute_dtype = compute_dtype

        k1, k2, k3, k4 = jax.random.split(key, 4)
        # Conv1d params (upsample branch): weight (C_out, C_in, K), bias (C_out,)
        bound = 1.0 / math.sqrt(in_channels * kernel_size)
        self.conv_w = jax.random.uniform(
            k1, (out_channels, in_channels, kernel_size), jnp.float32, -bound, bound)
        self.conv_b = jax.random.uniform(
            k2, (out_channels,), jnp.float32, -bound, bound)
        # ConvTranspose1d params (no-upsample branch): weight (C_in, C_out, K)
        bound_t = 1.0 / math.sqrt(out_channels * kernel_size)
        self.convT_w = jax.random.uniform(
            k3, (in_channels, out_channels, kernel_size), jnp.float32, -bound_t, bound_t)
        self.convT_b = jax.random.uniform(
            k4, (out_channels,), jnp.float32, -bound_t, bound_t)

    def __call__(self, x, in_feature):
        # x, in_feature: (N, C, L)  ->  output (N, C_out, L_out)
        if self.upsample:
            U = int(self.upsample)
            p = self.kernel_size // 2
            # channels-last preprocessing (XLA fuses these into one producer pass)
            x_nlc = jnp.transpose(x, (0, 2, 1))
            f_nlc = jnp.transpose(in_feature, (0, 2, 1))
            h = jnp.concatenate([x_nlc, f_nlc], axis=-1)    # cat on channels
            h = jnp.repeat(h, U, axis=1)                    # nearest Upsample
            h = jnp.pad(h, ((0, 0), (p, p), (0, 0)))        # ConstantPad1d(value=0)
            w_kic = jnp.transpose(self.conv_w, (2, 1, 0))   # (K, C_in, C_out)
            out = conv1d_valid_pallas(h, w_kic, self.conv_b, self.stride,
                                      tile_m=self.tile_m,
                                      compute_dtype=self.compute_dtype)
            return jnp.transpose(out, (0, 2, 1))
        else:
            return conv_transpose1d_pallas(
                x, self.convT_w, self.convT_b,
                stride=self.stride, padding=self.padding,
                output_padding=self.output_padding,
                tile_m=self.tile_m, compute_dtype=self.compute_dtype)


# ----------------------------------------------------------------------------
# Demo + correctness check against lax conv references
# ----------------------------------------------------------------------------
if __name__ == "__main__":
    key = jax.random.PRNGKey(0)
    kx, kf, kp1, kp2, kp3 = jax.random.split(key, 5)

    N, Cx, Cf, L = 2, 2, 2, 16
    C_in, C_out, K = Cx + Cf, 6, 5

    x = jax.random.normal(kx, (N, Cx, L), jnp.float32)
    in_feature = jax.random.normal(kf, (N, Cf, L), jnp.float32)

    # shared reference preprocessing for the upsample branch
    h_ref = jnp.concatenate([x, in_feature], axis=1)
    h_ref = jnp.repeat(h_ref, 2, axis=2)
    h_ref = jnp.pad(h_ref, ((0, 0), (0, 0), (K // 2, K // 2)))

    # ---- upsample branch, stride 1 (the common pulse2pulse path) ----
    layer_up = Transpose1dLayerMultiInput(C_in, C_out, K, stride=1,
                                          padding=11, upsample=2, key=kp1)
    out_up = jax.block_until_ready(layer_up(x, in_feature))
    ref_up = jax.lax.conv_general_dilated(
        h_ref, layer_up.conv_w, window_strides=(1,), padding="VALID",
        dimension_numbers=("NCH", "OIH", "NCH")) + layer_up.conv_b[None, :, None]
    assert out_up.shape == ref_up.shape == (N, C_out, 32), (out_up.shape, ref_up.shape)
    assert np.allclose(np.asarray(out_up), np.asarray(ref_up), atol=1e-4), "upsample branch mismatch"

    # ---- upsample branch, stride 2 (exercises the phase-packed strided conv) ----
    layer_up2 = Transpose1dLayerMultiInput(C_in, C_out, K, stride=2,
                                           padding=11, upsample=2, key=kp3)
    out_up2 = jax.block_until_ready(layer_up2(x, in_feature))
    ref_up2 = jax.lax.conv_general_dilated(
        h_ref, layer_up2.conv_w, window_strides=(2,), padding="VALID",
        dimension_numbers=("NCH", "OIH", "NCH")) + layer_up2.conv_b[None, :, None]
    assert out_up2.shape == ref_up2.shape, (out_up2.shape, ref_up2.shape)
    assert np.allclose(np.asarray(out_up2), np.asarray(ref_up2), atol=1e-4), "strided conv mismatch"

    # ---- no-upsample branch (ConvTranspose1d, polyphase) ----
    layer_tr = Transpose1dLayerMultiInput(C_in, C_out, K, stride=2,
                                          padding=2, upsample=None, output_padding=1, key=kp2)
    x_full = jnp.concatenate([x, in_feature], axis=1)   # (N, C_in, L) input for this branch
    out_tr = jax.block_until_ready(layer_tr(x_full, in_feature))
    ref_tr = jax.lax.conv_general_dilated(
        x_full, jnp.transpose(layer_tr.convT_w[:, :, ::-1], (1, 0, 2)),
        window_strides=(1,), padding=[(K - 1 - 2, K - 1 - 2 + 1)], lhs_dilation=(2,),
        dimension_numbers=("NCH", "OIH", "NCH")) + layer_tr.convT_b[None, :, None]
    assert out_tr.shape == ref_tr.shape == (N, C_out, (L - 1) * 2 - 2 * 2 + K + 1), out_tr.shape
    assert np.allclose(np.asarray(out_tr), np.asarray(ref_tr), atol=1e-4), "conv-transpose branch mismatch"

    print("KERNEL_OK")
</pallas_src>

<mosaic_0001>
module attributes {stable_mosaic.version = 11 : i64} {
  func.func @_conv1d_s1_kernel(%arg0: i32, %arg1: i32, %arg2: memref<1x32x4xf32, #tpu.memory_space<vmem>>, %arg3: memref<1x1x4x4xf32, #tpu.memory_space<vmem>>, %arg4: memref<20x6xf32, #tpu.memory_space<vmem>>, %arg5: memref<1x6xf32, #tpu.memory_space<vmem>>, %arg6: memref<1x32x6xf32, #tpu.memory_space<vmem>>) attributes {dimension_semantics = [#tpu.dimension_semantics<parallel>, #tpu.dimension_semantics<parallel>], iteration_bounds = array<i64: 2, 1>, scalar_prefetch = 0 : i64, scratch_operands = 0 : i64, tpu.core_type = #tpu.core_type<tc>, window_params = [{transform_indices = @transform_0, window_bounds = array<i64: 1, 32, 4>}, {transform_indices = @transform_1, window_bounds = array<i64: 1, 1, 4, 4>}, {pipeline_mode = #tpu.pipeline_mode<synchronous>, transform_indices = @transform_2, window_bounds = array<i64: 20, 6>}, {pipeline_mode = #tpu.pipeline_mode<synchronous>, transform_indices = @transform_3, window_bounds = array<i64: 1, 6>}, {transform_indices = @transform_4, window_bounds = array<i64: 1, 32, 6>}]} {
    %c0 = arith.constant 0 : index
    %c0_0 = arith.constant 0 : index
    %c0_1 = arith.constant 0 : index
    %0 = vector.load %arg2[%c0, %c0_0, %c0_1] : memref<1x32x4xf32, #tpu.memory_space<vmem>>, vector<1x32x4xf32>
    %1 = vector.shape_cast %0 : vector<1x32x4xf32> to vector<32x4xf32>
    %c0_2 = arith.constant 0 : index
    %c0_3 = arith.constant 0 : index
    %c0_4 = arith.constant 0 : index
    %c0_5 = arith.constant 0 : index
    %2 = vector.load %arg3[%c0_2, %c0_3, %c0_4, %c0_5] : memref<1x1x4x4xf32, #tpu.memory_space<vmem>>, vector<1x1x4x4xf32>
    %3 = vector.shape_cast %2 : vector<1x1x4x4xf32> to vector<4x4xf32>
    %4 = tpu.concatenate %1, %3 in 0 : vector<32x4xf32>, vector<4x4xf32> -> vector<36x4xf32>
    %5 = vector.extract_strided_slice %4 {offsets = [0, 0], sizes = [32, 4], strides = [1, 1]} : vector<36x4xf32> to vector<32x4xf32>
    %6 = vector.extract_strided_slice %4 {offsets = [1, 0], sizes = [32, 4], strides = [1, 1]} : vector<36x4xf32> to vector<32x4xf32>
    %7 = vector.extract_strided_slice %4 {offsets = [2, 0], sizes = [32, 4], strides = [1, 1]} : vector<36x4xf32> to vector<32x4xf32>
    %8 = vector.extract_strided_slice %4 {offsets = [3, 0], sizes = [32, 4], strides = [1, 1]} : vector<36x4xf32> to vector<32x4xf32>
    %9 = vector.extract_strided_slice %4 {offsets = [4, 0], sizes = [32, 4], strides = [1, 1]} : vector<36x4xf32> to vector<32x4xf32>
    %10 = tpu.concatenate %5, %6, %7, %8, %9 in 1 : vector<32x4xf32>, vector<32x4xf32>, vector<32x4xf32>, vector<32x4xf32>, vector<32x4xf32> -> vector<32x20xf32>
    %c0_6 = arith.constant 0 : index
    %c0_7 = arith.constant 0 : index
    %11 = vector.load %arg4[%c0_6, %c0_7] : memref<20x6xf32, #tpu.memory_space<vmem>>, vector<20x6xf32>
    %cst = arith.constant dense<0.000000e+00> : vector<32x6xf32>
    %12 = tpu.matmul %10, %11, %cst {dimension_numbers = #tpu.dot_dimension_numbers<[1], [0], [0], [1], [0, 0, 1, 1], [], []>} : vector<32x20xf32>, vector<20x6xf32>, vector<32x6xf32> -> vector<32x6xf32>
    %c0_8 = arith.constant 0 : index
    %c0_9 = arith.constant 0 : index
    %13 = vector.load %arg5[%c0_8, %c0_9] : memref<1x6xf32, #tpu.memory_space<vmem>>, vector<1x6xf32>
    %14 = vector.broadcast %13 : vector<1x6xf32> to vector<32x6xf32>
    %15 = arith.addf %12, %14 : vector<32x6xf32>
    %c0_10 = arith.constant 0 : index
    %c0_11 = arith.constant 0 : index
    %c0_12 = arith.constant 0 : index
    %16 = vector.load %arg6[%c0_10, %c0_11, %c0_12] : memref<1x32x6xf32, #tpu.memory_space<vmem>>, vector<1x32x6xf32>
    %17 = vector.shape_cast %16 : vector<1x32x6xf32> to vector<32x6xf32>
    %18 = vector.shape_cast %15 : vector<32x6xf32> to vector<1x32x6xf32>
    tpu.vector_store %arg6[%c0_10, %c0_11, %c0_12], %18 {strides = array<i32>} : memref<1x32x6xf32, #tpu.memory_space<vmem>>, vector<1x32x6xf32>,
    return
  }
  func.func @transform_0(%arg0: i32, %arg1: i32) -> (i32, i32, i32) {
    %c0_i32 = arith.constant 0 : i32
    %c0_i32_0 = arith.constant 0 : i32
    return %arg0, %arg1, %c0_i32 : i32, i32, i32
  }
  func.func @transform_1(%arg0: i32, %arg1: i32) -> (i32, i32, i32, i32) {
    %c0_i32 = arith.constant 0 : i32
    %c0_i32_0 = arith.constant 0 : i32
    %c0_i32_1 = arith.constant 0 : i32
    return %arg0, %arg1, %c0_i32, %c0_i32_0 : i32, i32, i32, i32
  }
  func.func @transform_2(%arg0: i32, %arg1: i32) -> (i32, i32) {
    %c0_i32 = arith.constant 0 : i32
    %c0_i32_0 = arith.constant 0 : i32
    %c0_i32_1 = arith.constant 0 : i32
    return %c0_i32, %c0_i32_0 : i32, i32
  }
  func.func @transform_3(%arg0: i32, %arg1: i32) -> (i32, i32) {
    %c0_i32 = arith.constant 0 : i32
    %c0_i32_0 = arith.constant 0 : i32
    %c0_i32_1 = arith.constant 0 : i32
    return %c0_i32, %c0_i32_0 : i32, i32
  }
  func.func @transform_4(%arg0: i32, %arg1: i32) -> (i32, i32, i32) {
    %c0_i32 = arith.constant 0 : i32
    %c0_i32_0 = arith.constant 0 : i32
    return %arg0, %arg1, %c0_i32 : i32, i32, i32
  }
}

</mosaic_0001>

<bundles_post_ra>
// kernel: tpu_custom_call.1
= control target key start
LH: loop header
LB: loop body
LE: loop exit
PB: predicated region body
PF: predicated region fallthrough
CT: control target
= control target key end

     0   :  { %s727_s15 = smov 0   ;;  %s729_s16 = smov 0   ;;  %s853_s0 = inlined_call_operand.vmem [shape: f32[2,32,4], index: 0, kind: input, shape index: {}]   ;;  %s854_s1 = inlined_call_operand.vmem [shape: f32[2,1,4,4], index: 1, kind: input, shape index: {}]   ;;  %s855_s2 = inlined_call_operand.vmem [shape: f32[20,6], index: 2, kind: input, shape index: {}]   ;;  %s856_s3 = inlined_call_operand.vmem [shape: f32[1,6], index: 3, kind: input, shape index: {}]   ;;  %s857_s4 = inlined_call_operand.vmem [shape: f32[2,32,6], index: 4, kind: output, shape index: {}]  }
   0x1   :  { %s731_s17 = smov 0  }
   0x2 LB: > { %s26_s18 = sadd.s32 1, %s692_s16  ;;  %p605_p0 = scmp.ge.s32.totalorder %s696_s17, 1  ;;  %s696_s17 = sphi %s731_s17, %s14_s17   ;;  %s692_s16 = sphi %s729_s16, %s859_s16   ;;  %s688_s15 = sphi %s727_s15, %s858_s15  }
   0x3   : > { %p28_p1 = scmp.ge.s32.totalorder %s26_s18, 2  ;;  %p197_p2 = scmp.lt.s32.totalorder %s696_s17, 3 }
   0x5   : > { %s861_s18 = smov (%p28_p1, %s26_s18), 0  ;;  %p198_p3 = pnand %p605_p0, %p197_p2 }
   0x6   : > { %p239_p4 = scmp.lt.s32.totalorder (!%p198_p3), %s688_s15, 1  ;;  %s698_s27 = smov (!%p198_p3), 4  }
   0x7   : > { %201 = sbr.rel (%p198_p3) target bundleno = 361 (0x169), region = 36  ;;  %s699_s30 = smov (!%p198_p3), 8  }
   0x8   : > { %s700_s9 = smov (!%p198_p3), 12   ;;  %s701_s10 = smov (!%p198_p3), 16  }
   0xc   : > { %s863_s15 = smov (!%p239_p4, %s688_s15), 1  ;;  %vm275_vm0 = vcmask 1046528   ;;  %vm297_vm1 = vcmask 1045504   ;;  %v385_v21 = vld [vmem:[%s855_s2 + $0x10] sm:$0xf]  ;;  %vm341_vm2 = vcmask 1043456  }
   0xd   : > { %s619_s19 = sshll.u32 %s863_s15, 5  ;;  %s608_s20 = sshll.u32 %s863_s15, 2  ;;  %628 = vmatprep.subr.msk.mxu0 %vm341_vm2, %v385_v21  ;;  %640 = vmatprep.subr.msk.mxu1 %vm341_vm2, %v385_v21  ;;  %vm319_vm3 = vcmask 1044480   ;;  %v384_v28 = vld [vmem:[%s855_s2 + $0x8] sm:$0xff]  ;;  %v383_v29 = vld [vmem:[%s855_s2] sm:$0xff]  ;;  %vm363_vm4 = vcmask 31744  }
   0xe   : > { %s246_s23 = scalar_lea.vmem %s853_s0, %s619_s19  ;;  %s254_s26 = scalar_lea.vmem %s854_s1, %s608_s20  ;;  %629 = vmatpush3.msk.msra.mxu0 %vm341_vm2, %v385_v21  ;;  %643 = vmatpush3.msk.msra.mxu1 %vm341_vm2, %v385_v21  ;;  %vm368_vm5 = vcmask 64512   ;;  %vm373_vm6 = vcmask 97280   ;;  %vm378_vm7 = vcmask 130048   ;;  %vm393_vm8 = vcmask 162816  }
   0xf   : > { %v757_v0 = vld [vmem:[%s246_s23 + $0x8] sm:$0xff]  ;;  %v759_v1 = vld [vmem:[%s246_s23 + $0x10] sm:$0xff]  ;;  %v761_v2 = vld [vmem:[%s246_s23] sm:$0xff]  ;;  %630 = vmatprep.subr.mxu0 %v384_v28  ;;  %641 = vmatprep.subr.mxu1 %v384_v28  ;;  %s263_s20 = scalar_lea.vmem %s857_s4, %s619_s19  ;;  %vm494_vm9 = vcmask 48128  }
  0x10   : > { %v277_v3 = vrot.slane %v757_v0, 1  ;;  %v279_v4 = vrot.slane %v759_v1, 1  ;;  %v276_v5 = vrot.slane %v761_v2, 1  ;;  %v766_v6 = vld [vmem:[%s246_s23 + $0x18] sm:$0xff]  ;;  %v768_v7 = vld [vmem:[%s254_s26] sm:$0xf]  ;;  %631 = vmatpush3.msra.mxu0 %v384_v28  ;;  %644 = vmatpush3.msra.mxu1 %v384_v28 }
  0x11   : > { %v281_v8 = vrot.slane %v766_v6, 1  ;;  %v283_v9 = vrot.slane %v768_v7, 1  ;;  %v301_v12 = vrot.slane %v759_v1, 2  ;;  %v303_v13 = vrot.slane %v766_v6, 2  ;;  %632 = vmatprep.subr.mxu0 %v383_v29  ;;  %642 = vmatprep.subr.mxu1 %v383_v29 }
  0x12   : > { %v280_v10 = vsel %vm275_vm0, %v277_v3, %v279_v4  ;;  %v278_v11 = vsel %vm275_vm0, %v276_v5, %v277_v3  ;;  %v298_v16 = vrot.slane %v761_v2, 2  ;;  %v299_v17 = vrot.slane %v757_v0, 2  ;;  %633 = vmatpush3.msra.mxu0 %v383_v29  ;;  %645 = vmatpush3.msra.mxu1 %v383_v29 }
  0x13   : > { %287 = vrot.lane.b32.xlu1 %v280_v10, %s698_s27  ;;  %285 = vrot.lane.b32.xlu0 %v278_v11, %s698_s27  ;;  %v284_v14 = vsel %vm275_vm0, %v281_v8, %v283_v9  ;;  %v282_v15 = vsel %vm275_vm0, %v279_v4, %v281_v8  ;;  %v304_v18 = vsel %vm297_vm1, %v301_v12, %v303_v13  ;;  %v305_v20 = vrot.slane %v768_v7, 2 }
  0x14   : > { %v300_v19 = vsel %vm297_vm1, %v298_v16, %v299_v17  ;;  %v302_v22 = vsel %vm297_vm1, %v299_v17, %v301_v12  ;;  %v323_v23 = vrot.slane %v759_v1, 3  ;;  %v325_v25 = vrot.slane %v766_v6, 3 }
  0x15   : > { %v306_v24 = vsel %vm297_vm1, %v303_v13, %v305_v20  ;;  %v320_v26 = vrot.slane %v761_v2, 3  ;;  %v321_v27 = vrot.slane %v757_v0, 3  ;;  %v327_v32 = vrot.slane %v768_v7, 3 }
  0x16   : > { %v326_v30 = vsel %vm319_vm3, %v323_v23, %v325_v25  ;;  %v345_v33 = vrot.slane %v759_v1, 4  ;;  %v347_v34 = vrot.slane %v766_v6, 4  ;;  %v342_v37 = vrot.slane %v761_v2, 4 }
  0x17   : > { %291 = vrot.lane.b32.xlu1 %v284_v14, %s698_s27  ;;  %289 = vrot.lane.b32.xlu0 %v282_v15, %s698_s27  ;;  %v322_v31 = vsel %vm319_vm3, %v320_v26, %v321_v27  ;;  %v328_v35 = vsel %vm319_vm3, %v325_v25, %v327_v32  ;;  %v324_v36 = vsel %vm319_vm3, %v321_v27, %v323_v23  ;;  %v343_v38 = vrot.slane %v757_v0, 4 }
  0x18   : > { %v348_v39 = vsel %vm341_vm2, %v345_v33, %v347_v34  ;;  %v349_v41 = vrot.slane %v768_v7, 4 }
  0x19   : > { %v344_v40 = vsel %vm341_vm2, %v342_v37, %v343_v38  ;;  %v346_v43 = vsel %vm341_vm2, %v343_v38, %v345_v33 }
  0x1a   : > { %v350_v42 = vsel %vm341_vm2, %v347_v34, %v349_v41 }
  0x1b   : > { %311 = vrot.lane.b32.xlu1 %v304_v18, %s699_s30  ;;  %307 = vrot.lane.b32.xlu0 %v300_v19, %s699_s30 }
  0x1f   : > { %313 = vrot.lane.b32.xlu1 %v306_v24, %s699_s30  ;;  %309 = vrot.lane.b32.xlu0 %v302_v22, %s699_s30 }
  0x23   : > { %333 = vrot.lane.b32.xlu1 %v326_v30, %s700_s9  ;;  %329 = vrot.lane.b32.xlu0 %v322_v31, %s700_s9 }
  0x27   : > { %335 = vrot.lane.b32.xlu1 %v328_v35, %s700_s9  ;;  %331 = vrot.lane.b32.xlu0 %v324_v36, %s700_s9 }
  0x2b   : > { %355 = vrot.lane.b32.xlu1 %v348_v39, %s701_s10  ;;  %351 = vrot.lane.b32.xlu0 %v344_v40, %s701_s10 }
  0x2f   : > { %357 = vrot.lane.b32.xlu1 %v350_v42, %s701_s10  ;;  %353 = vrot.lane.b32.xlu0 %v346_v43, %s701_s10 }
  0x85   : > { %v288_v44 = vpop.permute.xlu1 %287  ;;  %v286_v45 = vpop.permute.xlu0 %285 }
  0x86   : > { %v364_v56 = vsel %vm363_vm4, %v761_v2, %v286_v45 }
  0x89   : > { %v292_v46 = vpop.permute.xlu1 %291  ;;  %v290_v47 = vpop.permute.xlu0 %289 }
  0x8a   : > { %v366_v57 = vsel %vm363_vm4, %v759_v1, %v290_v47  ;;  %v365_v1 = vsel %vm363_vm4, %v757_v0, %v288_v44  ;;  %v367_v2 = vsel %vm363_vm4, %v766_v6, %v292_v46  ;;  %v611_v6 = vld [vmem:[%s856_s3] ss:$0 sm:$0xff] }
  0x8d   : > { %v312_v48 = vpop.permute.xlu1 %311  ;;  %v308_v49 = vpop.permute.xlu0 %307 }
  0x8e   : > { %v371_v58 = vsel %vm368_vm5, %v366_v57, %v312_v48  ;;  %v369_v59 = vsel %vm368_vm5, %v364_v56, %v308_v49 }
  0x91   : > { %v314_v50 = vpop.permute.xlu1 %313  ;;  %v310_v51 = vpop.permute.xlu0 %309 }
  0x92   : > { %v372_v5 = vsel %vm368_vm5, %v367_v2, %v314_v50  ;;  %v370_v7 = vsel %vm368_vm5, %v365_v1, %v310_v51 }
  0x95   : > { %v334_v52 = vpop.permute.xlu1 %333  ;;  %v330_v53 = vpop.permute.xlu0 %329 }
  0x96   : > { %v376_v60 = vsel %vm373_vm6, %v371_v58, %v334_v52  ;;  %v374_v61 = vsel %vm373_vm6, %v369_v59, %v330_v53 }
  0x99   : > { %v336_v54 = vpop.permute.xlu1 %335  ;;  %v332_v55 = vpop.permute.xlu0 %331 }
  0x9a   : > { %v377_v8 = vsel %vm373_vm6, %v372_v5, %v336_v54  ;;  %v375_v9 = vsel %vm373_vm6, %v370_v7, %v332_v55 }
  0x9d   : > { %v356_v62 = vpop.permute.xlu1 %355  ;;  %v352_v63 = vpop.permute.xlu0 %351 }
  0x9e   : > { %v379_v3 = vsel %vm378_vm7, %v374_v61, %v352_v63  ;;  %v381_v4 = vsel %vm378_vm7, %v376_v60, %v356_v62 }
  0x9f   : > { %634 = vmatprep.mubr.msk.f32.mxu0 %vm393_vm8, %v379_v3  ;;  %637 = vmatprep.mubr.msk.f32.mxu1 %vm393_vm8, %v381_v4 }
  0xa1   : > { %v358_v10 = vpop.permute.xlu1 %357  ;;  %v354_v11 = vpop.permute.xlu0 %353 }
  0xa2   : > { %v382_v12 = vsel %vm378_vm7, %v377_v8, %v358_v10  ;;  %v380_v0 = vsel %vm378_vm7, %v375_v9, %v354_v11 }
  0xa3   : > { %635 = vmatmul.mubr.msk.f32.vlgmr.msra.gmra.mxu0 %vm393_vm8, %v380_v0  ;;  %638 = vmatmul.mubr.msk.f32.vlgmr.msra.gmra.mxu1 %vm393_vm8, %v382_v12 }
 0x163   : > { %v636_v13 = vpop.f32.mrf.mxu0  ;;  %v639_v14 = vpop.f32.mrf.mxu1 }
 0x164   : > { %v481_v15 = vadd.f32 %v636_v13, %v611_v6  ;;  %v491_v16 = vadd.f32 %v639_v14, %v611_v6 }
 0x165   : > { %v475_v17 = vpop.f32.mrf.mxu0  ;;  %v485_v18 = vpop.f32.mrf.mxu1 }
 0x166   : > { %496 = vst.msk [vmem:[%s263_s20 + $0x8] sm:$0xff] %vm494_vm9, %v481_v15  ;;  %498 = vst.msk [vmem:[%s263_s20 + $0x18] sm:$0xff] %vm494_vm9, %v491_v16  ;;  %v476_v19 = vadd.f32 %v611_v6, %v475_v17  ;;  %v486_v20 = vadd.f32 %v611_v6, %v485_v18 }
 0x168   : > { %495 = vst.msk [vmem:[%s263_s20] sm:$0xff] %vm494_vm9, %v476_v19  ;;  %497 = vst.msk [vmem:[%s263_s20 + $0x10] sm:$0xff] %vm494_vm9, %v486_v20 }
 0x169 PF: > { %s14_s17 = sadd.s32 1, %s696_s17   ;;  %s858_s15 = smov %s692_s16 }
 0x16a   : > { %p11_p5 = scmp.ge.s32.totalorder %s14_s17, 4   ;;  %s859_s16 = smov %s861_s18 }
 0x16c   :  { %13 = sbr.rel (!%p11_p5) target bundleno = 2 (0x2), region = 69 }

</bundles_post_ra>
